<compile_context>
chip_gen: v5e
topology: v5e:2x2
jax: 0.10.0
libtpu: 0.0.40
codegen_flags: <defaults>
</compile_context>

<pallas_src>
import jax
import jax.numpy as jnp
from jax.experimental import pallas as pl
from jax.experimental.pallas import tpu as pltpu


def _round_up(x, m):
    return (x + m - 1) // m * m


_VMEM_CEILING_BYTES = 60 * 1024 * 1024        # stay under v7x's 64 MiB physical VMEM
_WEIGHT_TILE_BUDGET_BYTES = 12 * 1024 * 1024  # per-buffer budget for one (W1 cols, W2 rows) H-slice


def _autoencoder_kernel(x_ref, w1_ref, b1_ref, w2_ref, b2_ref, o_ref, acc_ref):
    """One (batch-tile, hidden-tile) step of y = relu(x @ W1 + b1) @ W2 + b2."""
    hk = pl.program_id(1)

    @pl.when(hk == 0)
    def _init():
        acc_ref[...] = jnp.zeros_like(acc_ref)

    # Cast x to the weight dtype so both matmuls take the fast bf16 MXU path;
    # accumulation is f32 via preferred_element_type.
    x = x_ref[...].astype(w1_ref.dtype)
    h = jnp.dot(x, w1_ref[...], preferred_element_type=jnp.float32)
    h = jnp.maximum(h + b1_ref[...], 0.0)                       # bias + ReLU in f32
    acc_ref[...] += jnp.dot(h.astype(w2_ref.dtype), w2_ref[...],
                            preferred_element_type=jnp.float32)

    @pl.when(hk == pl.num_programs(1) - 1)
    def _finalize():
        o_ref[...] = (acc_ref[...] + b2_ref[...]).astype(o_ref.dtype)


def prepare_params(w1_t, b1, w2_t, b2, *, compute_dtype=jnp.bfloat16):
    """Pad feature dims to 128 lanes and cast weights ONCE (reused every forward).

    w1_t: [d_in, hidden], w2_t: [hidden, d_in]  (pre-transposed: y = x @ W + b).
    Biases are kept in f32 (bias add / ReLU run in f32 inside the kernel).
    Zero padding is numerically safe: padded x cols are 0, padded W rows/cols are 0,
    padded b entries are 0, and padded output cols are sliced off after the call.
    """
    d_in, hidden = w1_t.shape
    D_pad = _round_up(d_in, 128)
    H_pad = _round_up(hidden, 128)
    w1_p = jnp.pad(w1_t, ((0, D_pad - d_in), (0, H_pad - hidden))).astype(compute_dtype)
    w2_p = jnp.pad(w2_t, ((0, H_pad - hidden), (0, D_pad - d_in))).astype(compute_dtype)
    b1_p = jnp.pad(b1, (0, H_pad - hidden)).astype(jnp.float32).reshape(1, H_pad)
    b2_p = jnp.pad(b2, (0, D_pad - d_in)).astype(jnp.float32).reshape(1, D_pad)
    return dict(w1=w1_p, b1=b1_p, w2=w2_p, b2=b2_p, d_in=d_in, hidden=hidden)


def autoencoder_forward(x, params, *, max_batch_tile=256):
    """x: [B, d_in] -> [B, d_in], same math as l2(relu(l1(x)))."""
    w1_p, b1_p, w2_p, b2_p = params["w1"], params["b1"], params["w2"], params["b2"]
    d_in, hidden = params["d_in"], params["hidden"]
    B = x.shape[0]
    assert x.shape[1] == d_in
    out_dtype = x.dtype

    D_pad, H_pad = w1_p.shape
    w_itemsize = jnp.dtype(w1_p.dtype).itemsize

    # ---- batch tiling: minimal padding; >=2 grid steps when B > 8 so v7x megacore
    # sharding of the "parallel" axis actually uses both TensorCores.
    B8 = _round_up(B, 8)
    n_b = max(1, -(-B8 // max_batch_tile))        # cdiv(B8, max_batch_tile)
    if B8 > 8:
        n_b = max(n_b, 2)
    TB = _round_up(-(-B8 // n_b), 8)
    B_pad = TB * n_b

    # ---- hidden (K) tiling: keep the per-step W1[:, hk] / W2[hk, :] slice pair
    # within a fixed VMEM budget so weights never need to be fully resident.
    bytes_per_hidden_col = 2 * D_pad * w_itemsize          # one W1 column + one W2 row
    th_budget = max(128, (_WEIGHT_TILE_BUDGET_BYTES // bytes_per_hidden_col) // 128 * 128)
    TH = min(H_pad, th_budget)
    if H_pad % TH != 0:
        # largest multiple of 128 within budget that evenly divides H_pad (trace-time only)
        TH = 128
        for cand in range(min(H_pad, th_budget), 127, -128):
            if H_pad % cand == 0:
                TH = cand
                break
    n_h = H_pad // TH

    # Constant-index operands can be single-buffered (no re-DMA across grid steps).
    w_mode = pl.Buffered(1) if n_h == 1 else pl.Buffered(2)

    # ---- pad x only when needed (weights were padded once in prepare_params).
    if B_pad != B or D_pad != d_in:
        x_p = jnp.pad(x, ((0, B_pad - B), (0, D_pad - d_in)))
    else:
        x_p = x

    # ---- VMEM budget from the real footprint (double-buffered x/out, weight bufs,
    # f32 accumulator), capped below v7x's 64 MiB physical VMEM.
    n_wbuf = 1 if n_h == 1 else 2
    x_bytes = 2 * TB * D_pad * jnp.dtype(x.dtype).itemsize
    out_bytes = 2 * TB * D_pad * jnp.dtype(out_dtype).itemsize
    acc_bytes = TB * D_pad * 4
    w_bytes = n_wbuf * 2 * D_pad * TH * w_itemsize
    b_bytes = n_wbuf * 8 * (TH + D_pad) * 4                # sublane-padded bias tiles
    footprint = x_bytes + out_bytes + acc_bytes + w_bytes + b_bytes
    vmem_limit = min(_VMEM_CEILING_BYTES,
                     max(int(footprint * 1.5) + (2 << 20), 8 << 20))

    out_p = pl.pallas_call(
        _autoencoder_kernel,
        out_shape=jax.ShapeDtypeStruct((B_pad, D_pad), out_dtype),
        grid=(n_b, n_h),
        in_specs=[
            # x tile marches along batch, constant across the H (reduction) axis.
            pl.BlockSpec((TB, D_pad), lambda i, k: (i, 0)),
            # Weight / bias slices: constant along batch; stream along H when n_h > 1.
            pl.BlockSpec((D_pad, TH), lambda i, k: (0, k), pipeline_mode=w_mode),
            pl.BlockSpec((1, TH), lambda i, k: (0, k), pipeline_mode=w_mode),
            pl.BlockSpec((TH, D_pad), lambda i, k: (k, 0), pipeline_mode=w_mode),
            pl.BlockSpec((1, D_pad), lambda i, k: (0, 0), pipeline_mode=pl.Buffered(1)),
        ],
        out_specs=pl.BlockSpec((TB, D_pad), lambda i, k: (i, 0)),
        scratch_shapes=[pltpu.VMEM((TB, D_pad), jnp.float32)],
        compiler_params=pltpu.CompilerParams(
            dimension_semantics=("parallel", "arbitrary"),
            vmem_limit_bytes=vmem_limit,
        ),
    )(x_p, w1_p, b1_p, w2_p, b2_p)

    if B_pad != B or D_pad != d_in:
        out_p = out_p[:B, :d_in]
    return out_p


def init_params(key, d_in, hidden, dtype=jnp.float32):
    """Deterministic init mimicking torch.nn.Linear (uniform +/- 1/sqrt(fan_in))."""
    k1, k2, k3, k4 = jax.random.split(key, 4)
    bound1 = 1.0 / jnp.sqrt(d_in)
    bound2 = 1.0 / jnp.sqrt(hidden)
    # Stored pre-transposed: [in_features, out_features]
    w1_t = jax.random.uniform(k1, (d_in, hidden), dtype, -bound1, bound1)
    b1 = jax.random.uniform(k2, (hidden,), dtype, -bound1, bound1)
    w2_t = jax.random.uniform(k3, (hidden, d_in), dtype, -bound2, bound2)
    b2 = jax.random.uniform(k4, (d_in,), dtype, -bound2, bound2)
    return w1_t, b1, w2_t, b2


if __name__ == "__main__":
    key = jax.random.PRNGKey(0)
    kx, kp = jax.random.split(key)

    batch, d_in, hidden = 8, 64, 32
    x = jax.random.normal(kx, (batch, d_in), jnp.float32)
    w1_t, b1, w2_t, b2 = init_params(kp, d_in, hidden)

    # Pad + cast weights once (bf16 MXU path), reuse across forward calls.
    params = prepare_params(w1_t, b1, w2_t, b2, compute_dtype=jnp.bfloat16)

    out = autoencoder_forward(x, params)
    out = jax.block_until_ready(out)

    # Reference in plain JAX using the same bf16-rounded weights (so the only
    # divergence from the kernel is bf16 matmul rounding; accumulation is f32).
    w1_f = params["w1"][:d_in, :hidden].astype(jnp.float32)
    w2_f = params["w2"][:hidden, :d_in].astype(jnp.float32)
    b1_f = params["b1"][0, :hidden]
    b2_f = params["b2"][0, :d_in]
    ref = jnp.maximum(x @ w1_f + b1_f, 0.0) @ w2_f + b2_f

    assert out.shape == (batch, d_in)
    assert jnp.allclose(out, ref, atol=2e-2, rtol=2e-2), float(jnp.max(jnp.abs(out - ref)))

    print("KERNEL_OK")
</pallas_src>

<mosaic_0001>
module attributes {stable_mosaic.version = 11 : i64} {
  func.func @_autoencoder_kernel(%arg0: i32, %arg1: i32, %arg2: memref<8x128xf32, #tpu.memory_space<vmem>>, %arg3: memref<128x128xbf16, #tpu.memory_space<vmem>>, %arg4: memref<1x128xf32, #tpu.memory_space<vmem>>, %arg5: memref<128x128xbf16, #tpu.memory_space<vmem>>, %arg6: memref<1x128xf32, #tpu.memory_space<vmem>>, %arg7: memref<8x128xf32, #tpu.memory_space<vmem>>, %arg8: memref<8x128xf32, #tpu.memory_space<vmem>>) attributes {dimension_semantics = [#tpu.dimension_semantics<parallel>, #tpu.dimension_semantics<arbitrary>], iteration_bounds = array<i64: 1, 1>, scalar_prefetch = 0 : i64, scratch_operands = 1 : i64, tpu.core_type = #tpu.core_type<tc>, window_params = [{transform_indices = @transform_0, window_bounds = array<i64: 8, 128>}, {pipeline_mode = #tpu.pipeline_mode<synchronous>, transform_indices = @transform_1, window_bounds = array<i64: 128, 128>}, {pipeline_mode = #tpu.pipeline_mode<synchronous>, transform_indices = @transform_2, window_bounds = array<i64: 1, 128>}, {pipeline_mode = #tpu.pipeline_mode<synchronous>, transform_indices = @transform_3, window_bounds = array<i64: 128, 128>}, {pipeline_mode = #tpu.pipeline_mode<synchronous>, transform_indices = @transform_4, window_bounds = array<i64: 1, 128>}, {transform_indices = @transform_5, window_bounds = array<i64: 8, 128>}]} {
    %c0_i32 = arith.constant 0 : i32
    %0 = arith.cmpi eq, %arg1, %c0_i32 : i32
    %1 = arith.extui %0 : i1 to i32
    %c0_i32_0 = arith.constant 0 : i32
    %2 = arith.cmpi ne, %1, %c0_i32_0 : i32
    scf.if %2 {
      %cst_16 = arith.constant 0.000000e+00 : f32
      %21 = vector.broadcast %cst_16 : f32 to vector<8x128xf32>
      %c0_17 = arith.constant 0 : index
      %c0_18 = arith.constant 0 : index
      %22 = vector.load %arg8[%c0_17, %c0_18] : memref<8x128xf32, #tpu.memory_space<vmem>>, vector<8x128xf32>
      tpu.vector_store %arg8[%c0_17, %c0_18], %21 {strides = array<i32>} : memref<8x128xf32, #tpu.memory_space<vmem>>, vector<8x128xf32>,
    } else {
    }
    %c0 = arith.constant 0 : index
    %c0_1 = arith.constant 0 : index
    %3 = vector.load %arg2[%c0, %c0_1] : memref<8x128xf32, #tpu.memory_space<vmem>>, vector<8x128xf32>
    %4 = arith.truncf %3 : vector<8x128xf32> to vector<8x128xbf16>
    %c0_2 = arith.constant 0 : index
    %c0_3 = arith.constant 0 : index
    %5 = vector.load %arg3[%c0_2, %c0_3] : memref<128x128xbf16, #tpu.memory_space<vmem>>, vector<128x128xbf16>
    %cst = arith.constant dense<0.000000e+00> : vector<8x128xf32>
    %6 = tpu.matmul %4, %5, %cst {dimension_numbers = #tpu.dot_dimension_numbers<[1], [0], [0], [1], [0, 0, 1, 1], [], []>} : vector<8x128xbf16>, vector<128x128xbf16>, vector<8x128xf32> -> vector<8x128xf32>
    %c0_4 = arith.constant 0 : index
    %c0_5 = arith.constant 0 : index
    %7 = vector.load %arg4[%c0_4, %c0_5] : memref<1x128xf32, #tpu.memory_space<vmem>>, vector<1x128xf32>
    %8 = vector.broadcast %7 : vector<1x128xf32> to vector<8x128xf32>
    %9 = arith.addf %6, %8 : vector<8x128xf32>
    %cst_6 = arith.constant 0.000000e+00 : f32
    %10 = vector.broadcast %cst_6 : f32 to vector<8x128xf32>
    %11 = arith.maximumf %9, %10 : vector<8x128xf32>
    %c0_7 = arith.constant 0 : index
    %c0_8 = arith.constant 0 : index
    %12 = vector.load %arg8[%c0_7, %c0_8] : memref<8x128xf32, #tpu.memory_space<vmem>>, vector<8x128xf32>
    %13 = arith.truncf %11 : vector<8x128xf32> to vector<8x128xbf16>
    %c0_9 = arith.constant 0 : index
    %c0_10 = arith.constant 0 : index
    %14 = vector.load %arg5[%c0_9, %c0_10] : memref<128x128xbf16, #tpu.memory_space<vmem>>, vector<128x128xbf16>
    %cst_11 = arith.constant dense<0.000000e+00> : vector<8x128xf32>
    %15 = tpu.matmul %13, %14, %cst_11 {dimension_numbers = #tpu.dot_dimension_numbers<[1], [0], [0], [1], [0, 0, 1, 1], [], []>} : vector<8x128xbf16>, vector<128x128xbf16>, vector<8x128xf32> -> vector<8x128xf32>
    %16 = arith.addf %12, %15 : vector<8x128xf32>
    %c0_12 = arith.constant 0 : index
    %c0_13 = arith.constant 0 : index
    %17 = vector.load %arg8[%c0_12, %c0_13] : memref<8x128xf32, #tpu.memory_space<vmem>>, vector<8x128xf32>
    tpu.vector_store %arg8[%c0_12, %c0_13], %16 {strides = array<i32>} : memref<8x128xf32, #tpu.memory_space<vmem>>, vector<8x128xf32>,
    %c0_i32_14 = arith.constant 0 : i32
    %18 = arith.cmpi eq, %arg1, %c0_i32_14 : i32
    %19 = arith.extui %18 : i1 to i32
    %c0_i32_15 = arith.constant 0 : i32
    %20 = arith.cmpi ne, %19, %c0_i32_15 : i32
    scf.if %20 {
      %c0_16 = arith.constant 0 : index
      %c0_17 = arith.constant 0 : index
      %21 = vector.load %arg8[%c0_16, %c0_17] : memref<8x128xf32, #tpu.memory_space<vmem>>, vector<8x128xf32>
      %c0_18 = arith.constant 0 : index
      %c0_19 = arith.constant 0 : index
      %22 = vector.load %arg6[%c0_18, %c0_19] : memref<1x128xf32, #tpu.memory_space<vmem>>, vector<1x128xf32>
      %23 = vector.broadcast %22 : vector<1x128xf32> to vector<8x128xf32>
      %24 = arith.addf %21, %23 : vector<8x128xf32>
      %c0_20 = arith.constant 0 : index
      %c0_21 = arith.constant 0 : index
      %25 = vector.load %arg7[%c0_20, %c0_21] : memref<8x128xf32, #tpu.memory_space<vmem>>, vector<8x128xf32>
      tpu.vector_store %arg7[%c0_20, %c0_21], %24 {strides = array<i32>} : memref<8x128xf32, #tpu.memory_space<vmem>>, vector<8x128xf32>,
    } else {
    }
    return
  }
  func.func @transform_0(%arg0: i32, %arg1: i32) -> (i32, i32) {
    %c0_i32 = arith.constant 0 : i32
    %c0_i32_0 = arith.constant 0 : i32
    return %arg0, %c0_i32 : i32, i32
  }
  func.func @transform_1(%arg0: i32, %arg1: i32) -> (i32, i32) {
    %c0_i32 = arith.constant 0 : i32
    %c0_i32_0 = arith.constant 0 : i32
    return %c0_i32, %arg1 : i32, i32
  }
  func.func @transform_2(%arg0: i32, %arg1: i32) -> (i32, i32) {
    %c0_i32 = arith.constant 0 : i32
    %c0_i32_0 = arith.constant 0 : i32
    return %c0_i32, %arg1 : i32, i32
  }
  func.func @transform_3(%arg0: i32, %arg1: i32) -> (i32, i32) {
    %c0_i32 = arith.constant 0 : i32
    %c0_i32_0 = arith.constant 0 : i32
    return %arg1, %c0_i32 : i32, i32
  }
  func.func @transform_4(%arg0: i32, %arg1: i32) -> (i32, i32) {
    %c0_i32 = arith.constant 0 : i32
    %c0_i32_0 = arith.constant 0 : i32
    %c0_i32_1 = arith.constant 0 : i32
    return %c0_i32, %c0_i32_0 : i32, i32
  }
  func.func @transform_5(%arg0: i32, %arg1: i32) -> (i32, i32) {
    %c0_i32 = arith.constant 0 : i32
    %c0_i32_0 = arith.constant 0 : i32
    return %arg0, %c0_i32 : i32, i32
  }
}

</mosaic_0001>

<bundles_post_ra>
// kernel: tpu_custom_call.1
= control target key start
LH: loop header
LB: loop body
LE: loop exit
PB: predicated region body
PF: predicated region fallthrough
CT: control target
= control target key end

     0   :  { %10 = vsyncpa [#allocation4], 0  ;;  %s508_s0 = inlined_call_operand.hbm [shape: f32[8,128], index: 0, kind: input, shape index: {}]   ;;  %s509_s1 = inlined_call_operand.hbm [shape: bf16[128,128], index: 1, kind: input, shape index: {}]   ;;  %s510_s2 = inlined_call_operand.vmem [shape: f32[1,128], index: 2, kind: input, shape index: {}]   ;;  %s511_s3 = inlined_call_operand.hbm [shape: bf16[128,128], index: 3, kind: input, shape index: {}]   ;;  %s512_s4 = inlined_call_operand.vmem [shape: f32[1,128], index: 4, kind: input, shape index: {}]   ;;  %s513_s5 = inlined_call_operand.hbm [shape: f32[8,128], index: 5, kind: output, shape index: {}]  }
   0x1   :  { %11 = vsyncpa [#allocation7], 0  ;;  %s28_s20 = sshll.u32 %s509_s1, 4  ;;  %s29_s20 = int_to_ptr.hbm [resolvable:$true] %s28_s20 }
   0x2   :  { %12 = vsyncpa [#allocation5], 0  ;;  %s454_s21 = smov [#allocation6]   ;;  %s18_s25 = sshll.u32 %s508_s0, 4  ;;  %s19_s25 = int_to_ptr.hbm [resolvable:$true] %s18_s25 }
   0x3   :  { %s30_s22 = sshll.u32 %s454_s21, 4  ;;  %s455_s26 = smov 64   ;;  %s31_s22 = int_to_ptr.vmem [resolvable:$true] %s30_s22 }
   0x4   :  { %s456_s27 = smov 4   ;;  %s457_s28 = smov [#allocation3]  }
   0x5   :  { %36 = dma.hbm_to_vmem [thread:$0]  %s29_s20, 1024, %s31_s22, [#allocation7], %s455_s26, %s455_s26, %s456_s27  }
   0x6   :  { %s20_s29 = sshll.u32 %s457_s28, 4  ;;  %s43_s7 = sshll.u32 %s511_s3, 4  ;;  %s21_s29 = int_to_ptr.vmem [resolvable:$true] %s20_s29  ;;  %s44_s7 = int_to_ptr.hbm [resolvable:$true] %s43_s7 }
   0x7   :  { %23 = dma.hbm_to_vmem [thread:$0]  %s19_s25, 128, %s21_s29, [#allocation4]  }
   0x8   :  { %s458_s1 = smov [#allocation8]  }
   0x9   :  { %s45_s8 = sshll.u32 %s458_s1, 4  ;;  %s46_s8 = int_to_ptr.vmem [resolvable:$true] %s45_s8 }
   0xa   :  { %51 = dma.hbm_to_vmem [thread:$0]  %s44_s7, 1024, %s46_s8, [#allocation7], %s455_s26, %s455_s26, %s456_s27  }
   0xb   :  { %448 = dma.done.wait [#allocation4], 128  }
   0xc   :  { %449 = vsyncadd [#allocation4], 4294967168 }
   0xd   :  { %450 = dma.done.wait [#allocation7], 2048  }
   0xe   :  { %451 = vsyncadd [#allocation7], 4294965248  ;;  %v335_v0 = vld [vmem:[#allocation6 + $0x38] sm:$0xff]  ;;  %v334_v1 = vld [vmem:[#allocation6 + $0x30] sm:$0xff]  ;;  %s459_s11 = smov [#allocation9]   ;;  %s253_s15 = sshll.u32 %s513_s5, 4  ;;  %s254_s15 = int_to_ptr.hbm [resolvable:$true] %s253_s15 }
   0xf   :  { %141 = vmatpush.bf16.msra.mxu0 %v335_v0  ;;  %v343_v2 = vld [vmem:[#allocation8 + $0x38] sm:$0xff]  ;;  %v342_v3 = vld [vmem:[#allocation8 + $0x30] sm:$0xff]  ;;  %v333_v4 = vld [vmem:[#allocation6 + $0x28] sm:$0xff]  ;;  %s251_s12 = sshll.u32 %s459_s11, 4  ;;  %s252_s12 = int_to_ptr.vmem [resolvable:$true] %s251_s12 }
  0x10   :  { %221 = vmatpush.bf16.msra.mxu1 %v343_v2  ;;  %v341_v5 = vld [vmem:[#allocation8 + $0x28] sm:$0xff]  ;;  %v332_v6 = vld [vmem:[#allocation6 + $0x20] sm:$0xff]  ;;  %v331_v8 = vld [vmem:[#allocation6 + $0x18] sm:$0xff] }
  0x11   :  { %v340_v7 = vld [vmem:[#allocation8 + $0x20] sm:$0xff]  ;;  %v339_v9 = vld [vmem:[#allocation8 + $0x18] sm:$0xff]  ;;  %v330_v10 = vld [vmem:[#allocation6 + $0x10] sm:$0xff] }
  0x12   :  { %v338_v11 = vld [vmem:[#allocation8 + $0x10] sm:$0xff]  ;;  %v329_v12 = vld [vmem:[#allocation6 + $0x8] sm:$0xff]  ;;  %v328_v13 = vld [vmem:[#allocation6] sm:$0xff] }
  0x13   :  { %142 = vmatpush.bf16.msra.mxu0 %v334_v1  ;;  %v71_v14 = vld [vmem:[#allocation3] sm:$0xff]  ;;  %v337_v16 = vld [vmem:[#allocation8 + $0x8] sm:$0xff]  ;;  %v336_v17 = vld [vmem:[#allocation8] sm:$0xff] }
  0x14   :  { %222 = vmatpush.bf16.msra.mxu1 %v342_v3  ;;  %v72_v15 = vpack.c.bf16 %v71_v14, %v71_v14  ;;  %v350_v18 = vld [vmem:[%s510_s2] ss:$0 sm:$0xff] }
  0x15   :  { %v351_v24 = vld [vmem:[%s512_s4] ss:$0 sm:$0xff] }
  0x17   :  { %143 = vmatpush.bf16.msra.mxu0 %v333_v4 }
  0x18   :  { %223 = vmatpush.bf16.msra.mxu1 %v341_v5 }
  0x1b   :  { %144 = vmatpush.bf16.msra.mxu0 %v332_v6 }
  0x1c   :  { %224 = vmatpush.bf16.msra.mxu1 %v340_v7 }
  0x1f   :  { %145 = vmatpush.bf16.msra.mxu0 %v331_v8 }
  0x20   :  { %225 = vmatpush.bf16.msra.mxu1 %v339_v9 }
  0x23   :  { %146 = vmatpush.bf16.msra.mxu0 %v330_v10 }
  0x24   :  { %226 = vmatpush.bf16.msra.mxu1 %v338_v11 }
  0x27   :  { %147 = vmatpush.bf16.msra.mxu0 %v329_v12 }
  0x28   :  { %227 = vmatpush.bf16.msra.mxu1 %v337_v16 }
  0x2b   :  { %148 = vmatpush.bf16.msra.mxu0 %v328_v13 }
  0x2c   :  { %228 = vmatpush.bf16.msra.mxu1 %v336_v17 }
  0x2e   :  { %149 = vmatmul.bf16.vlgmr.msra.gmra.mxu0 %v72_v15 }
  0xab   :  { %v150_v19 = vpop.f32.mrf.mxu0 }
  0xac   :  { %v151_v20 = vadd.f32 %v350_v18, %v150_v19 }
  0xae   :  { %v154_v21 = vmax.f32 %v151_v20, 0.0 }
  0xb0   :  { %v156_v22 = vpack.c.bf16 %v154_v21, %v154_v21 }
  0xb2   :  { %229 = vmatmul.bf16.vlgmr.msra.gmra.mxu1 %v156_v22 }
  0xb3   :  { %v152_v23 = vpop.f32.mrf.mxu0 }
 0x12f   :  { %v230_v25 = vpop.f32.mrf.mxu1 }
 0x130   :  { %v244_v26 = vadd.f32 %v351_v24, %v230_v25 }
 0x132   :  { %245 = vst [vmem:[#allocation9] sm:$0xff] %v244_v26 }
 0x133   :  { %256 = dma.vmem_to_hbm [thread:$0]  %s252_s12, 128, %s254_s15, [#allocation5]  }
 0x137   :  { %v232_v27 = vpop.f32.mrf.mxu1 }
 0x138   :  { %452 = dma.done.wait [#allocation5], 128  }
 0x139   :  { %453 = vsyncadd [#allocation5], 4294967168 }
 0x13a   :  { %261 = vsyncpa [#allocation4], 1 }
 0x13b   :  { %262 = vsyncpa [#allocation7], 1 }
 0x13c   :  { %263 = vsyncpa [#allocation5], 1 }

</bundles_post_ra>
